<compile_context>
chip_gen: v7x
topology: tpu7x:2x2x1
jax: 0.10.0
libtpu: 0.0.40
codegen_flags: <defaults>
</compile_context>

<pallas_src>
import functools

import jax
import jax.numpy as jnp
from jax.experimental import pallas as pl
from jax.experimental.pallas import tpu as pltpu


def _fbeta_stats_kernel(x_ref, t_ref, tp_ref, sx_ref, st_ref, *, soft):
    """Accumulate per-class tp / sum(x) / sum(t) into (8, C) output slabs.

    Grid = (num_cores, tiles_per_core).  Axis 0 is 'parallel' (each core owns
    its own output block); axis 1 is the batch reduction ('arbitrary').
    """
    i = pl.program_id(1)

    @pl.when(i == 0)
    def _():
        tp_ref[...] = jnp.zeros_like(tp_ref)
        sx_ref[...] = jnp.zeros_like(sx_ref)
        st_ref[...] = jnp.zeros_like(st_ref)

    x = x_ref[...].astype(jnp.float32)
    t = t_ref[...].astype(jnp.float32)
    if not soft:
        x = (x >= 0.5).astype(jnp.float32)

    bt, c = x.shape
    # Reshape (bt, C) -> (bt//8, 8, C) and reduce only over the major axis:
    # elementwise adds between (8, C) vreg tiles (VPU), no per-tile XLU reduce.
    x3 = x.reshape(bt // 8, 8, c)
    t3 = t.reshape(bt // 8, 8, c)

    tp_ref[...] += jnp.sum(x3 * t3, axis=0)
    sx_ref[...] += jnp.sum(x3, axis=0)
    st_ref[...] += jnp.sum(t3, axis=0)
    # NOTE: tn is computed by the PyTorch module but never used in the loss,
    # so it is intentionally omitted.


def fbeta_loss(x, target, weight=None, *, beta=1, soft=True,
               batch_tile=None, num_cores=1):
    """Pallas implementation of FBetaLoss.forward (reduction='mean')."""
    eps = 1e-7
    x = jnp.asarray(x, jnp.float32)
    target = jnp.asarray(target, jnp.float32)
    n, c = x.shape
    assert target.shape == (n, c)

    # --- choose a large, VMEM-safe batch tile (multiple of 8 sublanes) ------
    if batch_tile is None:
        # Keep double-buffered input tiles (2 arrays x 2 pipeline buffers)
        # under ~32 MiB so it fits every generation's scoped VMEM budget.
        budget_bytes = 32 * 1024 * 1024
        max_rows = budget_bytes // (2 * 2 * c * 4)
        batch_tile = int(min(max(max_rows, 8), 4096))
    # round to a multiple of 8 and never exceed (rounded-up) N
    batch_tile = max(8, (batch_tile // 8) * 8)
    batch_tile = min(batch_tile, ((n + 7) // 8) * 8)

    # --- zero-pad N so it divides num_cores * batch_tile --------------------
    # Zero rows contribute nothing to tp / sum_x / sum_t, so padding is exact.
    chunk = num_cores * batch_tile
    n_pad = ((n + chunk - 1) // chunk) * chunk
    if n_pad != n:
        pad = n_pad - n
        x = jnp.pad(x, ((0, pad), (0, 0)))
        target = jnp.pad(target, ((0, pad), (0, 0)))
    tiles_per_core = n_pad // chunk

    kernel = functools.partial(_fbeta_stats_kernel, soft=soft)
    stats_shape = jax.ShapeDtypeStruct((num_cores * 8, c), jnp.float32)

    def in_map(p, i):
        return (p * tiles_per_core + i, 0)

    def out_map(p, i):
        return (p, 0)

    tp8, sx8, st8 = pl.pallas_call(
        kernel,
        out_shape=(stats_shape, stats_shape, stats_shape),
        grid_spec=pltpu.PrefetchScalarGridSpec(
            num_scalar_prefetch=0,
            grid=(num_cores, tiles_per_core),
            in_specs=[
                pl.BlockSpec((batch_tile, c), in_map),  # input tile
                pl.BlockSpec((batch_tile, c), in_map),  # target tile
            ],
            out_specs=[
                pl.BlockSpec((8, c), out_map),  # tp partials
                pl.BlockSpec((8, c), out_map),  # sum(x) partials
                pl.BlockSpec((8, c), out_map),  # sum(t) partials
            ],
        ),
        compiler_params=pltpu.CompilerParams(
            dimension_semantics=("parallel", "arbitrary"),
            vmem_limit_bytes=48 << 20,
        ),
    )(x, target)

    # --- tiny epilogue in plain JAX (runs once, negligible) -----------------
    tp = jnp.sum(tp8, axis=0)
    sum_x = jnp.sum(sx8, axis=0)
    sum_t = jnp.sum(st8, axis=0)
    fp = sum_x - tp
    fn = sum_t - tp
    precision = tp / (tp + fp + eps)
    recall = tp / (tp + fn + eps)
    beta2 = float(beta) ** 2
    f = (1.0 + beta2) * (precision * recall) / (beta2 * precision + recall + eps)
    if weight is not None:
        f = f * jnp.asarray(weight, jnp.float32).reshape(-1)
    return 1.0 - jnp.mean(f)


def fbeta_loss_ref(x, target, weight=None, *, beta=1, soft=True):
    """Pure-JAX reference mirroring the PyTorch module."""
    eps = 1e-7
    t = target.astype(jnp.float32)
    xi = x.astype(jnp.float32)
    if not soft:
        xi = (xi >= 0.5).astype(jnp.float32)
    tp = jnp.sum(xi * t, axis=0)
    fp = jnp.sum(xi * (1 - t), axis=0)
    fn = jnp.sum((1 - xi) * t, axis=0)
    precision = tp / (tp + fp + eps)
    recall = tp / (tp + fn + eps)
    beta2 = float(beta) ** 2
    f = (1 + beta2) * (precision * recall) / (beta2 * precision + recall + eps)
    if weight is not None:
        f = f * jnp.asarray(weight, jnp.float32).reshape(-1)
    return 1.0 - jnp.mean(f)


if __name__ == "__main__":
    key = jax.random.PRNGKey(0)
    k1, k2, k3 = jax.random.split(key, 3)

    N, C = 16, 128  # batch x num_classes (small demo shapes)
    x = jax.nn.sigmoid(jax.random.normal(k1, (N, C), jnp.float32))       # soft preds in (0, 1)
    target = (jax.random.uniform(k2, (N, C)) > 0.5).astype(jnp.float32)  # binary targets
    weight = jax.random.uniform(k3, (C,), jnp.float32) + 0.5             # per-class weight

    # soft=True, no weight
    loss = jax.block_until_ready(fbeta_loss(x, target, beta=1, soft=True))
    ref = fbeta_loss_ref(x, target, beta=1, soft=True)
    assert jnp.allclose(loss, ref, atol=1e-5, rtol=1e-5), (loss, ref)

    # soft=False (hard thresholding), with weight and beta=2
    loss2 = jax.block_until_ready(
        fbeta_loss(x, target, weight=weight, beta=2, soft=False))
    ref2 = fbeta_loss_ref(x, target, weight=weight, beta=2, soft=False)
    assert jnp.allclose(loss2, ref2, atol=1e-5, rtol=1e-5), (loss2, ref2)

    # ragged N (exercises zero-padding path) with a small forced tile
    x_r, t_r = x[:13], target[:13]
    loss3 = jax.block_until_ready(
        fbeta_loss(x_r, t_r, beta=1, soft=True, batch_tile=8))
    ref3 = fbeta_loss_ref(x_r, t_r, beta=1, soft=True)
    assert jnp.allclose(loss3, ref3, atol=1e-5, rtol=1e-5), (loss3, ref3)

    print("KERNEL_OK")
</pallas_src>

<mosaic_0001>
module attributes {stable_mosaic.version = 11 : i64} {
  func.func @_fbeta_stats_kernel(%arg0: i32, %arg1: i32, %arg2: memref<16x128xf32, #tpu.memory_space<vmem>>, %arg3: memref<16x128xf32, #tpu.memory_space<vmem>>, %arg4: memref<8x128xf32, #tpu.memory_space<vmem>>, %arg5: memref<8x128xf32, #tpu.memory_space<vmem>>, %arg6: memref<8x128xf32, #tpu.memory_space<vmem>>) attributes {dimension_semantics = [#tpu.dimension_semantics<parallel>, #tpu.dimension_semantics<arbitrary>], iteration_bounds = array<i64: 1, 1>, scalar_prefetch = 0 : i64, scratch_operands = 0 : i64, tpu.core_type = #tpu.core_type<tc>, window_params = [{transform_indices = @transform_0, window_bounds = array<i64: 16, 128>}, {transform_indices = @transform_1, window_bounds = array<i64: 16, 128>}, {transform_indices = @transform_2, window_bounds = array<i64: 8, 128>}, {transform_indices = @transform_3, window_bounds = array<i64: 8, 128>}, {transform_indices = @transform_4, window_bounds = array<i64: 8, 128>}]} {
    %c0_i32 = arith.constant 0 : i32
    %0 = arith.cmpi eq, %arg1, %c0_i32 : i32
    %1 = arith.extui %0 : i1 to i32
    %c0_i32_0 = arith.constant 0 : i32
    %2 = arith.cmpi ne, %1, %c0_i32_0 : i32
    scf.if %2 {
      %cst_18 = arith.constant 0.000000e+00 : f32
      %20 = vector.broadcast %cst_18 : f32 to vector<8x128xf32>
      %c0_19 = arith.constant 0 : index
      %c0_20 = arith.constant 0 : index
      %21 = vector.load %arg4[%c0_19, %c0_20] : memref<8x128xf32, #tpu.memory_space<vmem>>, vector<8x128xf32>
      tpu.vector_store %arg4[%c0_19, %c0_20], %20 {strides = array<i32>} : memref<8x128xf32, #tpu.memory_space<vmem>>, vector<8x128xf32>,
      %cst_21 = arith.constant 0.000000e+00 : f32
      %22 = vector.broadcast %cst_21 : f32 to vector<8x128xf32>
      %c0_22 = arith.constant 0 : index
      %c0_23 = arith.constant 0 : index
      %23 = vector.load %arg5[%c0_22, %c0_23] : memref<8x128xf32, #tpu.memory_space<vmem>>, vector<8x128xf32>
      tpu.vector_store %arg5[%c0_22, %c0_23], %22 {strides = array<i32>} : memref<8x128xf32, #tpu.memory_space<vmem>>, vector<8x128xf32>,
      %cst_24 = arith.constant 0.000000e+00 : f32
      %24 = vector.broadcast %cst_24 : f32 to vector<8x128xf32>
      %c0_25 = arith.constant 0 : index
      %c0_26 = arith.constant 0 : index
      %25 = vector.load %arg6[%c0_25, %c0_26] : memref<8x128xf32, #tpu.memory_space<vmem>>, vector<8x128xf32>
      tpu.vector_store %arg6[%c0_25, %c0_26], %24 {strides = array<i32>} : memref<8x128xf32, #tpu.memory_space<vmem>>, vector<8x128xf32>,
    } else {
    }
    %c0 = arith.constant 0 : index
    %c0_1 = arith.constant 0 : index
    %3 = vector.load %arg2[%c0, %c0_1] : memref<16x128xf32, #tpu.memory_space<vmem>>, vector<16x128xf32>
    %c0_2 = arith.constant 0 : index
    %c0_3 = arith.constant 0 : index
    %4 = vector.load %arg3[%c0_2, %c0_3] : memref<16x128xf32, #tpu.memory_space<vmem>>, vector<16x128xf32>
    %5 = vector.shape_cast %3 : vector<16x128xf32> to vector<2x8x128xf32>
    %6 = vector.shape_cast %4 : vector<16x128xf32> to vector<2x8x128xf32>
    %c0_4 = arith.constant 0 : index
    %c0_5 = arith.constant 0 : index
    %7 = vector.load %arg4[%c0_4, %c0_5] : memref<8x128xf32, #tpu.memory_space<vmem>>, vector<8x128xf32>
    %8 = arith.mulf %5, %6 : vector<2x8x128xf32>
    %cst = arith.constant dense<0.000000e+00> : vector<8x128xf32>
    %9 = vector.multi_reduction <add>, %8, %cst [0] : vector<2x8x128xf32> to vector<8x128xf32>
    %10 = arith.addf %7, %9 : vector<8x128xf32>
    %c0_6 = arith.constant 0 : index
    %c0_7 = arith.constant 0 : index
    %11 = vector.load %arg4[%c0_6, %c0_7] : memref<8x128xf32, #tpu.memory_space<vmem>>, vector<8x128xf32>
    tpu.vector_store %arg4[%c0_6, %c0_7], %10 {strides = array<i32>} : memref<8x128xf32, #tpu.memory_space<vmem>>, vector<8x128xf32>,
    %c0_8 = arith.constant 0 : index
    %c0_9 = arith.constant 0 : index
    %12 = vector.load %arg5[%c0_8, %c0_9] : memref<8x128xf32, #tpu.memory_space<vmem>>, vector<8x128xf32>
    %cst_10 = arith.constant dense<0.000000e+00> : vector<8x128xf32>
    %13 = vector.multi_reduction <add>, %5, %cst_10 [0] : vector<2x8x128xf32> to vector<8x128xf32>
    %14 = arith.addf %12, %13 : vector<8x128xf32>
    %c0_11 = arith.constant 0 : index
    %c0_12 = arith.constant 0 : index
    %15 = vector.load %arg5[%c0_11, %c0_12] : memref<8x128xf32, #tpu.memory_space<vmem>>, vector<8x128xf32>
    tpu.vector_store %arg5[%c0_11, %c0_12], %14 {strides = array<i32>} : memref<8x128xf32, #tpu.memory_space<vmem>>, vector<8x128xf32>,
    %c0_13 = arith.constant 0 : index
    %c0_14 = arith.constant 0 : index
    %16 = vector.load %arg6[%c0_13, %c0_14] : memref<8x128xf32, #tpu.memory_space<vmem>>, vector<8x128xf32>
    %cst_15 = arith.constant dense<0.000000e+00> : vector<8x128xf32>
    %17 = vector.multi_reduction <add>, %6, %cst_15 [0] : vector<2x8x128xf32> to vector<8x128xf32>
    %18 = arith.addf %16, %17 : vector<8x128xf32>
    %c0_16 = arith.constant 0 : index
    %c0_17 = arith.constant 0 : index
    %19 = vector.load %arg6[%c0_16, %c0_17] : memref<8x128xf32, #tpu.memory_space<vmem>>, vector<8x128xf32>
    tpu.vector_store %arg6[%c0_16, %c0_17], %18 {strides = array<i32>} : memref<8x128xf32, #tpu.memory_space<vmem>>, vector<8x128xf32>,
    return
  }
  func.func @transform_0(%arg0: i32, %arg1: i32) -> (i32, i32) {
    %c1_i32 = arith.constant 1 : i32
    %0 = arith.muli %arg0, %c1_i32 : i32
    %1 = arith.addi %0, %arg1 : i32
    %c0_i32 = arith.constant 0 : i32
    %c0_i32_0 = arith.constant 0 : i32
    return %1, %c0_i32 : i32, i32
  }
  func.func @transform_1(%arg0: i32, %arg1: i32) -> (i32, i32) {
    %c1_i32 = arith.constant 1 : i32
    %0 = arith.muli %arg0, %c1_i32 : i32
    %1 = arith.addi %0, %arg1 : i32
    %c0_i32 = arith.constant 0 : i32
    %c0_i32_0 = arith.constant 0 : i32
    return %1, %c0_i32 : i32, i32
  }
  func.func @transform_2(%arg0: i32, %arg1: i32) -> (i32, i32) {
    %c0_i32 = arith.constant 0 : i32
    %c0_i32_0 = arith.constant 0 : i32
    return %arg0, %c0_i32 : i32, i32
  }
  func.func @transform_3(%arg0: i32, %arg1: i32) -> (i32, i32) {
    %c0_i32 = arith.constant 0 : i32
    %c0_i32_0 = arith.constant 0 : i32
    return %arg0, %c0_i32 : i32, i32
  }
  func.func @transform_4(%arg0: i32, %arg1: i32) -> (i32, i32) {
    %c0_i32 = arith.constant 0 : i32
    %c0_i32_0 = arith.constant 0 : i32
    return %arg0, %c0_i32 : i32, i32
  }
}

</mosaic_0001>

<bundles_post_ra>
// kernel: tpu_custom_call.1
= control target key start
LH: loop header
LB: loop body
LE: loop exit
PB: predicated region body
PF: predicated region fallthrough
CT: control target
= control target key end

     0   :  { %10 = vsyncpa [#allocation3], 0  ;;  %s356_s0 = inlined_call_operand.hbm [shape: f32[16,128], index: 0, kind: input, shape index: {}]   ;;  %s357_s1 = inlined_call_operand.hbm [shape: f32[16,128], index: 1, kind: input, shape index: {}]   ;;  %s358_s2 = inlined_call_operand.hbm [shape: f32[8,128], index: 2, kind: output, shape index: {0}]   ;;  %s359_s3 = inlined_call_operand.hbm [shape: f32[8,128], index: 3, kind: output, shape index: {1}]   ;;  %s360_s4 = inlined_call_operand.hbm [shape: f32[8,128], index: 4, kind: output, shape index: {2}]  }
   0x1   :  { %11 = vsyncpa [#allocation6], 0 }
   0x2   :  { %12 = vsyncpa [#allocation4], 0 }
   0x3   :  { %13 = vsyncpa [#allocation9], 0  ;;  %s250_s15 = smov [#allocation2]   ;;  %s132_s19 = scalar_lea.hbm %s356_s0, 256 }
   0x4   :  { %s23_s16 = sshll.u32 %s250_s15, 4  ;;  %p133_p0 = scmp.ne.s32.totalorder %s356_s0, %s132_s19  ;;  %s24_s16 = int_to_ptr.vmem [resolvable:$true] %s23_s16 }
   0x5   :  { %p136_p1 = scmp.lt.u32.totalorder %s132_s19, %s356_s0 }
   0x7   :  { %p138_p2 = pnand %p136_p1, %p133_p0 }
   0x9   :  { %141 = shalt.err (!%p138_p2)
}
   0xa   :  { %s142_s24 = scalar_lea.vmem %s24_s16, 256  ;;  %p147_p4 = scmp.lt.s32.totalorder %s24_s16, %s24_s16 }
   0xb   :  { %p143_p3 = scmp.ne.s32.totalorder %s24_s16, %s142_s24  ;;  %p148_p5 = scmp.lt.s32.totalorder %s142_s24, %s142_s24 }
   0xd   :  { %p149_p6 = por %p148_p5, %p147_p4 }
   0xf   :  { %p150_p7 = pnand %p149_p6, %p143_p3 }
  0x11   :  { %153 = shalt.err (!%p150_p7)
}
  0x12   :  { %s251_s25 = smov 128   ;;  %s252_s26 = smov 8  }
  0x13   :  { %29 = dma.hbm_to_vmem [thread:$0]  %s356_s0, 256, %s24_s16, [#allocation3], %s251_s25, %s251_s25, %s252_s26  }
  0x14   :  { %s253_s29 = smov [#allocation5]   ;;  %s154_s7 = scalar_lea.hbm %s357_s1, 256 }
  0x15   :  { %s39_s30 = sshll.u32 %s253_s29, 4  ;;  %p155_p8 = scmp.ne.s32.totalorder %s357_s1, %s154_s7  ;;  %s40_s30 = int_to_ptr.vmem [resolvable:$true] %s39_s30 }
  0x16   :  { %p158_p9 = scmp.lt.u32.totalorder %s154_s7, %s357_s1 }
  0x18   :  { %p160_p10 = pnand %p158_p9, %p155_p8 }
  0x1a   :  { %163 = shalt.err (!%p160_p10)
}
  0x1b   :  { %s164_s12 = scalar_lea.vmem %s40_s30, 256  ;;  %p169_p12 = scmp.lt.s32.totalorder %s40_s30, %s40_s30 }
  0x1c   :  { %p165_p11 = scmp.ne.s32.totalorder %s40_s30, %s164_s12  ;;  %p170_p13 = scmp.lt.s32.totalorder %s164_s12, %s164_s12 }
  0x1e   :  { %p171_p0 = por %p170_p13, %p169_p12 }
  0x20   :  { %p172_p1 = pnand %p171_p0, %p165_p11 }
  0x22   :  { %175 = shalt.err (!%p172_p1)
}
  0x23   :  { %45 = dma.hbm_to_vmem [thread:$0]  %s357_s1, 256, %s40_s30, [#allocation6], %s251_s25, %s251_s25, %s252_s26  }
  0x24   :  { %242 = dma.done.wait [#allocation3], 256  }
  0x25   :  { %243 = vsyncadd [#allocation3], 4294967040 }
  0x26   :  { %244 = dma.done.wait [#allocation6], 256  }
  0x27   :  { %245 = vsyncadd [#allocation6], 4294967040  ;;  %v63_v0 = vld [vmem:[#allocation2] sm:$0xff]  ;;  %v64_v1 = vld [vmem:[#allocation2 + $0x8] sm:$0xff]  ;;  %s254_s14 = smov [#allocation8]   ;;  %s255_s16 = smov [#allocation10]  }
  0x28   :  { %v65_v2 = vld [vmem:[#allocation5] sm:$0xff]  ;;  %s97_s15 = sshll.u32 %s254_s14, 4  ;;  %v74_v3 = vadd.f32 %v64_v1, %v63_v0  ;;  %v66_v4 = vld [vmem:[#allocation5 + $0x8] sm:$0xff]  ;;  %s107_s17 = sshll.u32 %s255_s16, 4  ;;  %s98_s15 = int_to_ptr.vmem [resolvable:$true] %s97_s15  ;;  %s306_s17 = int_to_ptr.vmem [resolvable:$true] %s107_s17 }
  0x29   :  { %v68_v5 = vmul.f32 %v65_v2, %v63_v0  ;;  %v69_v6 = vmul.f32 %v66_v4, %v64_v1  ;;  %v78_v7 = vadd.f32 %v66_v4, %v65_v2  ;;  %s256_s18 = smov [#allocation7]   ;;  %s176_s1 = scalar_lea.vmem %s98_s15, 128 }
  0x2a   :  { %s87_s19 = sshll.u32 %s256_s18, 4  ;;  %76 = vst [vmem:[#allocation8] sm:$0xff] %v74_v3  ;;  %p177_p2 = scmp.ne.s32.totalorder %s98_s15, %s176_s1  ;;  %s308_s19 = int_to_ptr.vmem [resolvable:$true] %s87_s19 }
  0x2b   :  { %v70_v8 = vadd.f32 %v69_v6, %v68_v5  ;;  %80 = vst [vmem:[#allocation10] sm:$0xff] %v78_v7  ;;  %p181_p3 = scmp.lt.s32.totalorder %s98_s15, %s98_s15  ;;  %p182_p4 = scmp.lt.s32.totalorder %s176_s1, %s176_s1 }
  0x2d   :  { %p183_p5 = por %p182_p4, %p181_p3 }
  0x2f   :  { %p184_p6 = pnand %p183_p5, %p177_p2 }
  0x31   :  { %187 = shalt.err (!%p184_p6)
}
  0x32   :  { %s188_s22 = scalar_lea.hbm %s359_s3, 128 }
  0x33   :  { %p189_p7 = scmp.ne.s32.totalorder %s359_s3, %s188_s22  ;;  %p192_p8 = scmp.lt.u32.totalorder %s188_s22, %s359_s3 }
  0x35   :  { %p194_p9 = pnand %p192_p8, %p189_p7 }
  0x37   :  { %197 = shalt.err (!%p194_p9)
}
  0x38   :  { %100 = dma.vmem_to_hbm [thread:$0]  %s98_s15, 128, %s359_s3, [#allocation9]  }
  0x39   :  { %s198_s29 = scalar_lea.vmem %s306_s17, 128  ;;  %p203_p11 = scmp.lt.s32.totalorder %s306_s17, %s306_s17 }
  0x3a   :  { %p199_p10 = scmp.ne.s32.totalorder %s306_s17, %s198_s29  ;;  %p204_p12 = scmp.lt.s32.totalorder %s198_s29, %s198_s29 }
  0x3c   :  { %p205_p13 = por %p204_p12, %p203_p11 }
  0x3e   :  { %p206_p0 = pnand %p205_p13, %p199_p10 }
  0x40   :  { %209 = shalt.err (!%p206_p0)
}
  0x41   :  { %s210_s6 = scalar_lea.hbm %s360_s4, 128 }
  0x42   :  { %p211_p1 = scmp.ne.s32.totalorder %s360_s4, %s210_s6  ;;  %p214_p2 = scmp.lt.u32.totalorder %s210_s6, %s360_s4 }
  0x44   :  { %p216_p3 = pnand %p214_p2, %p211_p1 }
  0x46   :  { %219 = shalt.err (!%p216_p3)
}
  0x47   :  { %110 = dma.vmem_to_hbm [thread:$0]  %s306_s17, 128, %s360_s4, [#allocation9]   ;;  %72 = vst [vmem:[#allocation7] sm:$0xff] %v70_v8 }
  0x48   :  { %s220_s12 = scalar_lea.vmem %s308_s19, 128  ;;  %p225_p5 = scmp.lt.s32.totalorder %s308_s19, %s308_s19 }
  0x49   :  { %p221_p4 = scmp.ne.s32.totalorder %s308_s19, %s220_s12  ;;  %p226_p6 = scmp.lt.s32.totalorder %s220_s12, %s220_s12 }
  0x4b   :  { %p227_p7 = por %p226_p6, %p225_p5 }
  0x4d   :  { %p228_p8 = pnand %p227_p7, %p221_p4 }
  0x4f   :  { %231 = shalt.err (!%p228_p8)
}
  0x50   :  { %s232_s14 = scalar_lea.hbm %s358_s2, 128 }
  0x51   :  { %p233_p9 = scmp.ne.s32.totalorder %s358_s2, %s232_s14  ;;  %p236_p10 = scmp.lt.u32.totalorder %s232_s14, %s358_s2 }
  0x53   :  { %p238_p11 = pnand %p236_p10, %p233_p9 }
  0x55   :  { %241 = shalt.err (!%p238_p11)
}
  0x56   :  { %90 = dma.vmem_to_hbm [thread:$0]  %s308_s19, 128, %s358_s2, [#allocation4]  }
  0x57   :  { %246 = dma.done.wait [#allocation4], 128  }
  0x58   :  { %247 = vsyncadd [#allocation4], 4294967168 }
  0x59   :  { %248 = dma.done.wait [#allocation9], 256  }
  0x5a   :  { %249 = vsyncadd [#allocation9], 4294967040 }
  0x5b   :  { %120 = vsyncpa [#allocation3], 1 }
  0x5c   :  { %121 = vsyncpa [#allocation6], 1 }
  0x5d   :  { %122 = vsyncpa [#allocation4], 1 }
  0x5e   :  { %123 = vsyncpa [#allocation9], 1 }

</bundles_post_ra>
